<compile_context>
chip_gen: v5e
topology: v5e:2x2
jax: 0.10.0
libtpu: 0.0.40
codegen_flags: <defaults>
</compile_context>

<pallas_src>
import functools

import jax
import jax.numpy as jnp
from jax.experimental import pallas as pl
from jax.experimental.pallas import tpu as pltpu


# ---------------------------------------------------------------------------
# Kernel
# ---------------------------------------------------------------------------
def _basic_block_kernel(x_ref, sdn_ref, sup_ref, w1_ref, s1_ref, b1_ref,
                        w2_ref, s2_ref, b2_ref, o_ref):
    """Fused conv-bn-relu-conv-bn-add-relu on a (batch_block, H, W*C) tile.

    x_ref  : (NB, H, W*Cin)      f32   lane-dense activations
    sdn_ref: (NB*H, NB*H)        bf16  row-shift-down (zero at each image's top row)
    sup_ref: (NB*H, NB*H)        bf16  row-shift-up   (zero at each image's bottom row)
    w1_ref : (3, W*Cin, W*Cout)  bf16  banded conv1 weights (one per kernel row)
    s1/b1  : (1, W*Cout)         f32   folded BN1 scale / bias (tiled over W)
    w2_ref : (3, W*Cout, W*Cout) bf16  banded conv2 weights
    s2/b2  : (1, W*Cout)         f32   folded BN2 scale / bias
    o_ref  : (NB, H, W*Cout)     f32   output tile
    """
    nb, h, wc_in = x_ref.shape
    m = nb * h
    wc_out = o_ref.shape[2]

    x = x_ref[...].reshape(m, wc_in)     # merge batch rows (sublane-major, ~free)
    sdn = sdn_ref[...]
    sup = sup_ref[...]

    def conv3x3(inp_f32, w_ref):
        xb = inp_f32.astype(jnp.bfloat16)
        # Rows h-1 / h+1 with zero rows at the image borders, produced by exact
        # 0/1 shift matmuls on the MXU (f32 accumulation -> exact row select).
        x_dn = jnp.dot(sdn, xb, preferred_element_type=jnp.float32).astype(jnp.bfloat16)
        x_up = jnp.dot(sup, xb, preferred_element_type=jnp.float32).astype(jnp.bfloat16)
        acc = jnp.dot(x_dn, w_ref[0], preferred_element_type=jnp.float32)
        acc += jnp.dot(xb, w_ref[1], preferred_element_type=jnp.float32)
        acc += jnp.dot(x_up, w_ref[2], preferred_element_type=jnp.float32)
        return acc                        # f32, (m, wc_out)

    h1 = conv3x3(x, w1_ref)
    h1 = jnp.maximum(h1 * s1_ref[...] + b1_ref[...], 0.0)    # bn1 + relu (f32, VPU)

    h2 = conv3x3(h1, w2_ref)
    h2 = h2 * s2_ref[...] + b2_ref[...]                       # bn2

    # residual add + relu; full-width (lane-dense) unmasked store
    o_ref[...] = jnp.maximum(h2 + x, 0.0).reshape(nb, h, wc_out)


# ---------------------------------------------------------------------------
# Wrapper-side operand preparation
# ---------------------------------------------------------------------------
def _band_matrices(w_hwio, width):
    """Fold the 3 horizontal taps + channel mixing of each kernel row into one
    banded matrix:  M[kh, w_in*Cin+ci, w_out*Cout+co] = w[kh, w_in-w_out+1, ci, co]
    (zero outside the band, which also realizes horizontal zero padding)."""
    kh_, kw_, cin, cout = w_hwio.shape
    w_in = jnp.arange(width)[:, None]
    w_out = jnp.arange(width)[None, :]
    kw = w_in - w_out + 1                                     # (W, W)
    valid = (kw >= 0) & (kw < kw_)
    blocks = w_hwio[:, jnp.clip(kw, 0, kw_ - 1)]              # (3, W, W, Cin, Cout)
    blocks = jnp.where(valid[None, :, :, None, None], blocks, 0.0)
    blocks = jnp.transpose(blocks, (0, 1, 3, 2, 4))           # (3, W, Cin, W, Cout)
    return blocks.reshape(kh_, width * cin, width * cout)


def _shift_matrices(batch_block, height):
    """Block-diagonal sub/super-diagonal 0/1 matrices: out[i] = in[i-1] / in[i+1],
    with zero rows at each image's top / bottom (vertical zero padding)."""
    m = batch_block * height
    r = jnp.arange(m)
    sdn = jnp.eye(m, k=-1, dtype=jnp.float32) * ((r % height) != 0)[:, None].astype(jnp.float32)
    sup = jnp.eye(m, k=1, dtype=jnp.float32) * ((r % height) != height - 1)[:, None].astype(jnp.float32)
    return sdn.astype(jnp.bfloat16), sup.astype(jnp.bfloat16)


@functools.partial(jax.jit, static_argnames=("stride", "batch_block"))
def basic_block_nhwc(x, w1_hwio, s1, b1, w2_hwio, s2, b2, *, stride=1, batch_block=1):
    """Fused BasicBlock forward.  x: (N, H, W, C) float32 NHWC (model-native
    layout; keep NHWC end-to-end to avoid per-block HBM transpose passes)."""
    if stride != 1:
        # TODO(synk): stride > 1 / Cin != Cout needs a downsample branch which the
        # reference module does not define.
        raise NotImplementedError("only stride=1 is supported")
    n, height, width, cin = x.shape
    cout = w1_hwio.shape[-1]
    assert cin == cout, "residual add requires in_channels == out_channels"
    assert n % batch_block == 0

    wci, wco = width * cin, width * cout
    m = batch_block * height

    # --- lane-dense operands (all small, built once per call) ---
    x2 = x.astype(jnp.float32).reshape(n, height, wci)        # contiguous, ~free
    w1b = _band_matrices(w1_hwio.astype(jnp.float32), width).astype(jnp.bfloat16)
    w2b = _band_matrices(w2_hwio.astype(jnp.float32), width).astype(jnp.bfloat16)
    s1f = jnp.tile(s1.astype(jnp.float32), width).reshape(1, wco)
    b1f = jnp.tile(b1.astype(jnp.float32), width).reshape(1, wco)
    s2f = jnp.tile(s2.astype(jnp.float32), width).reshape(1, wco)
    b2f = jnp.tile(b2.astype(jnp.float32), width).reshape(1, wco)
    sdn, sup = _shift_matrices(batch_block, height)

    # explicit VMEM budget: all blocks double-buffered + headroom (never below
    # the 32 MiB scoped default so we only ever raise the limit).
    block_bytes = (batch_block * height * (wci + wco) * 4     # x + out blocks
                   + 2 * m * m * 2                            # shift matrices (bf16)
                   + 3 * (wci * wco + wco * wco) * 2          # banded weights (bf16)
                   + 4 * wco * 4)                             # folded BN vectors
    vmem_limit = int(max(32 * 1024 * 1024, 2 * block_bytes + 4 * 1024 * 1024))

    out2 = pl.pallas_call(
        _basic_block_kernel,
        out_shape=jax.ShapeDtypeStruct((n, height, wco), jnp.float32),
        grid_spec=pltpu.PrefetchScalarGridSpec(
            num_scalar_prefetch=0,
            grid=(n // batch_block,),
            in_specs=[
                pl.BlockSpec((batch_block, height, wci), lambda i: (i, 0, 0)),
                pl.BlockSpec((m, m), lambda i: (0, 0)),
                pl.BlockSpec((m, m), lambda i: (0, 0)),
                pl.BlockSpec((3, wci, wco), lambda i: (0, 0, 0)),
                pl.BlockSpec((1, wco), lambda i: (0, 0)),
                pl.BlockSpec((1, wco), lambda i: (0, 0)),
                pl.BlockSpec((3, wco, wco), lambda i: (0, 0, 0)),
                pl.BlockSpec((1, wco), lambda i: (0, 0)),
                pl.BlockSpec((1, wco), lambda i: (0, 0)),
            ],
            out_specs=pl.BlockSpec((batch_block, height, wco), lambda i: (i, 0, 0)),
        ),
        compiler_params=pltpu.CompilerParams(
            dimension_semantics=("parallel",),     # megacore split on v7x
            vmem_limit_bytes=vmem_limit,
        ),
    )(x2, sdn, sup, w1b, s1f, b1f, w2b, s2f, b2f)

    return out2.reshape(n, height, width, cout)


def basic_block_nchw(x_nchw, w1_hwio, s1, b1, w2_hwio, s2, b2, *, stride=1):
    """PyTorch-layout convenience wrapper.  In a full network, keep NHWC
    end-to-end instead of paying these transposes at every block."""
    y = basic_block_nhwc(jnp.transpose(x_nchw, (0, 2, 3, 1)),
                         w1_hwio, s1, b1, w2_hwio, s2, b2, stride=stride)
    return jnp.transpose(y, (0, 3, 1, 2))


# ---------------------------------------------------------------------------
# Reference + demo
# ---------------------------------------------------------------------------
def _fold_bn(gamma, beta, mean, var, eps=1e-5):
    scale = gamma / jnp.sqrt(var + eps)
    return scale, beta - mean * scale


def _reference_nhwc(x, w1, s1, b1, w2, s2, b2):
    """Plain-JAX reference (lax conv; bf16 operands / f32 accumulation to mirror
    the kernel's MXU precision)."""
    conv = lambda a, w: jax.lax.conv_general_dilated(
        a.astype(jnp.bfloat16), w.astype(jnp.bfloat16),
        window_strides=(1, 1), padding=((1, 1), (1, 1)),
        dimension_numbers=("NHWC", "HWIO", "NHWC"),
        preferred_element_type=jnp.float32)
    h = jnp.maximum(conv(x, w1) * s1 + b1, 0.0)
    h = conv(h, w2) * s2 + b2
    return jnp.maximum(h + x.astype(jnp.float32), 0.0)


if __name__ == "__main__":
    # W * C == 128 -> each image row is exactly one dense 128-lane vector.
    N, C, H, W = 2, 8, 16, 16
    key = jax.random.PRNGKey(0)
    ks = jax.random.split(key, 10)

    x_nchw = jax.random.normal(ks[0], (N, C, H, W), jnp.float32)

    # Conv weights: PyTorch (Cout, Cin, 3, 3) -> HWIO (3, 3, Cin, Cout).
    w1 = jnp.transpose(jax.random.normal(ks[1], (C, C, 3, 3), jnp.float32) * 0.1, (2, 3, 1, 0))
    w2 = jnp.transpose(jax.random.normal(ks[2], (C, C, 3, 3), jnp.float32) * 0.1, (2, 3, 1, 0))

    # BatchNorm parameters (eval mode: running stats).
    g1 = 1.0 + 0.1 * jax.random.normal(ks[3], (C,), jnp.float32)
    be1 = 0.1 * jax.random.normal(ks[4], (C,), jnp.float32)
    m1 = 0.1 * jax.random.normal(ks[5], (C,), jnp.float32)
    v1 = 1.0 + 0.1 * jnp.abs(jax.random.normal(ks[6], (C,), jnp.float32))
    g2 = 1.0 + 0.1 * jax.random.normal(ks[7], (C,), jnp.float32)
    be2 = 0.1 * jax.random.normal(ks[8], (C,), jnp.float32)
    m2 = 0.1 * jax.random.normal(ks[9], (C,), jnp.float32)
    v2 = jnp.ones((C,), jnp.float32)

    s1, b1 = _fold_bn(g1, be1, m1, v1)
    s2, b2 = _fold_bn(g2, be2, m2, v2)

    # One-time layout conversion at the PyTorch boundary; a full model would
    # stay NHWC throughout.
    x_nhwc = jnp.transpose(x_nchw, (0, 2, 3, 1))

    out = jax.block_until_ready(basic_block_nhwc(x_nhwc, w1, s1, b1, w2, s2, b2))
    ref = jax.block_until_ready(_reference_nhwc(x_nhwc, w1, s1, b1, w2, s2, b2))

    assert out.shape == (N, H, W, C)
    err = float(jnp.max(jnp.abs(out - ref)))
    assert err < 1e-2, f"mismatch vs JAX reference: max abs err = {err}"
    print("KERNEL_OK")
</pallas_src>

<mosaic_0001>
module attributes {stable_mosaic.version = 11 : i64} {
  func.func @_basic_block_kernel(%arg0: i32, %arg1: memref<1x16x128xf32, #tpu.memory_space<vmem>>, %arg2: memref<16x16xbf16, #tpu.memory_space<vmem>>, %arg3: memref<16x16xbf16, #tpu.memory_space<vmem>>, %arg4: memref<3x128x128xbf16, #tpu.memory_space<vmem>>, %arg5: memref<1x128xf32, #tpu.memory_space<vmem>>, %arg6: memref<1x128xf32, #tpu.memory_space<vmem>>, %arg7: memref<3x128x128xbf16, #tpu.memory_space<vmem>>, %arg8: memref<1x128xf32, #tpu.memory_space<vmem>>, %arg9: memref<1x128xf32, #tpu.memory_space<vmem>>, %arg10: memref<1x16x128xf32, #tpu.memory_space<vmem>>) attributes {dimension_semantics = [#tpu.dimension_semantics<parallel>], iteration_bounds = array<i64: 2>, scalar_prefetch = 0 : i64, scratch_operands = 0 : i64, tpu.core_type = #tpu.core_type<tc>, window_params = [{transform_indices = @transform_0, window_bounds = array<i64: 1, 16, 128>}, {pipeline_mode = #tpu.pipeline_mode<synchronous>, transform_indices = @transform_1, window_bounds = array<i64: 16, 16>}, {pipeline_mode = #tpu.pipeline_mode<synchronous>, transform_indices = @transform_2, window_bounds = array<i64: 16, 16>}, {pipeline_mode = #tpu.pipeline_mode<synchronous>, transform_indices = @transform_3, window_bounds = array<i64: 3, 128, 128>}, {pipeline_mode = #tpu.pipeline_mode<synchronous>, transform_indices = @transform_4, window_bounds = array<i64: 1, 128>}, {pipeline_mode = #tpu.pipeline_mode<synchronous>, transform_indices = @transform_5, window_bounds = array<i64: 1, 128>}, {pipeline_mode = #tpu.pipeline_mode<synchronous>, transform_indices = @transform_6, window_bounds = array<i64: 3, 128, 128>}, {pipeline_mode = #tpu.pipeline_mode<synchronous>, transform_indices = @transform_7, window_bounds = array<i64: 1, 128>}, {pipeline_mode = #tpu.pipeline_mode<synchronous>, transform_indices = @transform_8, window_bounds = array<i64: 1, 128>}, {transform_indices = @transform_9, window_bounds = array<i64: 1, 16, 128>}]} {
    %c0 = arith.constant 0 : index
    %c0_0 = arith.constant 0 : index
    %c0_1 = arith.constant 0 : index
    %0 = vector.load %arg1[%c0, %c0_0, %c0_1] : memref<1x16x128xf32, #tpu.memory_space<vmem>>, vector<1x16x128xf32>
    %1 = vector.shape_cast %0 : vector<1x16x128xf32> to vector<16x128xf32>
    %c0_2 = arith.constant 0 : index
    %c0_3 = arith.constant 0 : index
    %2 = vector.load %arg2[%c0_2, %c0_3] : memref<16x16xbf16, #tpu.memory_space<vmem>>, vector<16x16xbf16>
    %c0_4 = arith.constant 0 : index
    %c0_5 = arith.constant 0 : index
    %3 = vector.load %arg3[%c0_4, %c0_5] : memref<16x16xbf16, #tpu.memory_space<vmem>>, vector<16x16xbf16>
    %4 = arith.truncf %1 : vector<16x128xf32> to vector<16x128xbf16>
    %cst = arith.constant dense<0.000000e+00> : vector<16x128xf32>
    %5 = tpu.matmul %2, %4, %cst {dimension_numbers = #tpu.dot_dimension_numbers<[1], [0], [0], [1], [0, 0, 1, 1], [], []>} : vector<16x16xbf16>, vector<16x128xbf16>, vector<16x128xf32> -> vector<16x128xf32>
    %6 = arith.truncf %5 : vector<16x128xf32> to vector<16x128xbf16>
    %cst_6 = arith.constant dense<0.000000e+00> : vector<16x128xf32>
    %7 = tpu.matmul %3, %4, %cst_6 {dimension_numbers = #tpu.dot_dimension_numbers<[1], [0], [0], [1], [0, 0, 1, 1], [], []>} : vector<16x16xbf16>, vector<16x128xbf16>, vector<16x128xf32> -> vector<16x128xf32>
    %8 = arith.truncf %7 : vector<16x128xf32> to vector<16x128xbf16>
    %c0_7 = arith.constant 0 : index
    %c0_8 = arith.constant 0 : index
    %c0_9 = arith.constant 0 : index
    %9 = vector.load %arg4[%c0_7, %c0_8, %c0_9] : memref<3x128x128xbf16, #tpu.memory_space<vmem>>, vector<1x128x128xbf16>
    %10 = vector.shape_cast %9 : vector<1x128x128xbf16> to vector<128x128xbf16>
    %cst_10 = arith.constant dense<0.000000e+00> : vector<16x128xf32>
    %11 = tpu.matmul %6, %10, %cst_10 {dimension_numbers = #tpu.dot_dimension_numbers<[1], [0], [0], [1], [0, 0, 1, 1], [], []>} : vector<16x128xbf16>, vector<128x128xbf16>, vector<16x128xf32> -> vector<16x128xf32>
    %c1 = arith.constant 1 : index
    %c0_11 = arith.constant 0 : index
    %c0_12 = arith.constant 0 : index
    %12 = vector.load %arg4[%c1, %c0_11, %c0_12] : memref<3x128x128xbf16, #tpu.memory_space<vmem>>, vector<1x128x128xbf16>
    %13 = vector.shape_cast %12 : vector<1x128x128xbf16> to vector<128x128xbf16>
    %cst_13 = arith.constant dense<0.000000e+00> : vector<16x128xf32>
    %14 = tpu.matmul %4, %13, %cst_13 {dimension_numbers = #tpu.dot_dimension_numbers<[1], [0], [0], [1], [0, 0, 1, 1], [], []>} : vector<16x128xbf16>, vector<128x128xbf16>, vector<16x128xf32> -> vector<16x128xf32>
    %15 = arith.addf %11, %14 : vector<16x128xf32>
    %c2 = arith.constant 2 : index
    %c0_14 = arith.constant 0 : index
    %c0_15 = arith.constant 0 : index
    %16 = vector.load %arg4[%c2, %c0_14, %c0_15] : memref<3x128x128xbf16, #tpu.memory_space<vmem>>, vector<1x128x128xbf16>
    %17 = vector.shape_cast %16 : vector<1x128x128xbf16> to vector<128x128xbf16>
    %cst_16 = arith.constant dense<0.000000e+00> : vector<16x128xf32>
    %18 = tpu.matmul %8, %17, %cst_16 {dimension_numbers = #tpu.dot_dimension_numbers<[1], [0], [0], [1], [0, 0, 1, 1], [], []>} : vector<16x128xbf16>, vector<128x128xbf16>, vector<16x128xf32> -> vector<16x128xf32>
    %19 = arith.addf %15, %18 : vector<16x128xf32>
    %c0_17 = arith.constant 0 : index
    %c0_18 = arith.constant 0 : index
    %20 = vector.load %arg5[%c0_17, %c0_18] : memref<1x128xf32, #tpu.memory_space<vmem>>, vector<1x128xf32>
    %21 = vector.broadcast %20 : vector<1x128xf32> to vector<16x128xf32>
    %22 = arith.mulf %19, %21 : vector<16x128xf32>
    %c0_19 = arith.constant 0 : index
    %c0_20 = arith.constant 0 : index
    %23 = vector.load %arg6[%c0_19, %c0_20] : memref<1x128xf32, #tpu.memory_space<vmem>>, vector<1x128xf32>
    %24 = vector.broadcast %23 : vector<1x128xf32> to vector<16x128xf32>
    %25 = arith.addf %22, %24 : vector<16x128xf32>
    %cst_21 = arith.constant 0.000000e+00 : f32
    %26 = vector.broadcast %cst_21 : f32 to vector<16x128xf32>
    %27 = arith.maximumf %25, %26 : vector<16x128xf32>
    %28 = arith.truncf %27 : vector<16x128xf32> to vector<16x128xbf16>
    %cst_22 = arith.constant dense<0.000000e+00> : vector<16x128xf32>
    %29 = tpu.matmul %2, %28, %cst_22 {dimension_numbers = #tpu.dot_dimension_numbers<[1], [0], [0], [1], [0, 0, 1, 1], [], []>} : vector<16x16xbf16>, vector<16x128xbf16>, vector<16x128xf32> -> vector<16x128xf32>
    %30 = arith.truncf %29 : vector<16x128xf32> to vector<16x128xbf16>
    %cst_23 = arith.constant dense<0.000000e+00> : vector<16x128xf32>
    %31 = tpu.matmul %3, %28, %cst_23 {dimension_numbers = #tpu.dot_dimension_numbers<[1], [0], [0], [1], [0, 0, 1, 1], [], []>} : vector<16x16xbf16>, vector<16x128xbf16>, vector<16x128xf32> -> vector<16x128xf32>
    %32 = arith.truncf %31 : vector<16x128xf32> to vector<16x128xbf16>
    %c0_24 = arith.constant 0 : index
    %c0_25 = arith.constant 0 : index
    %c0_26 = arith.constant 0 : index
    %33 = vector.load %arg7[%c0_24, %c0_25, %c0_26] : memref<3x128x128xbf16, #tpu.memory_space<vmem>>, vector<1x128x128xbf16>
    %34 = vector.shape_cast %33 : vector<1x128x128xbf16> to vector<128x128xbf16>
    %cst_27 = arith.constant dense<0.000000e+00> : vector<16x128xf32>
    %35 = tpu.matmul %30, %34, %cst_27 {dimension_numbers = #tpu.dot_dimension_numbers<[1], [0], [0], [1], [0, 0, 1, 1], [], []>} : vector<16x128xbf16>, vector<128x128xbf16>, vector<16x128xf32> -> vector<16x128xf32>
    %c1_28 = arith.constant 1 : index
    %c0_29 = arith.constant 0 : index
    %c0_30 = arith.constant 0 : index
    %36 = vector.load %arg7[%c1_28, %c0_29, %c0_30] : memref<3x128x128xbf16, #tpu.memory_space<vmem>>, vector<1x128x128xbf16>
    %37 = vector.shape_cast %36 : vector<1x128x128xbf16> to vector<128x128xbf16>
    %cst_31 = arith.constant dense<0.000000e+00> : vector<16x128xf32>
    %38 = tpu.matmul %28, %37, %cst_31 {dimension_numbers = #tpu.dot_dimension_numbers<[1], [0], [0], [1], [0, 0, 1, 1], [], []>} : vector<16x128xbf16>, vector<128x128xbf16>, vector<16x128xf32> -> vector<16x128xf32>
    %39 = arith.addf %35, %38 : vector<16x128xf32>
    %c2_32 = arith.constant 2 : index
    %c0_33 = arith.constant 0 : index
    %c0_34 = arith.constant 0 : index
    %40 = vector.load %arg7[%c2_32, %c0_33, %c0_34] : memref<3x128x128xbf16, #tpu.memory_space<vmem>>, vector<1x128x128xbf16>
    %41 = vector.shape_cast %40 : vector<1x128x128xbf16> to vector<128x128xbf16>
    %cst_35 = arith.constant dense<0.000000e+00> : vector<16x128xf32>
    %42 = tpu.matmul %32, %41, %cst_35 {dimension_numbers = #tpu.dot_dimension_numbers<[1], [0], [0], [1], [0, 0, 1, 1], [], []>} : vector<16x128xbf16>, vector<128x128xbf16>, vector<16x128xf32> -> vector<16x128xf32>
    %43 = arith.addf %39, %42 : vector<16x128xf32>
    %c0_36 = arith.constant 0 : index
    %c0_37 = arith.constant 0 : index
    %44 = vector.load %arg8[%c0_36, %c0_37] : memref<1x128xf32, #tpu.memory_space<vmem>>, vector<1x128xf32>
    %45 = vector.broadcast %44 : vector<1x128xf32> to vector<16x128xf32>
    %46 = arith.mulf %43, %45 : vector<16x128xf32>
    %c0_38 = arith.constant 0 : index
    %c0_39 = arith.constant 0 : index
    %47 = vector.load %arg9[%c0_38, %c0_39] : memref<1x128xf32, #tpu.memory_space<vmem>>, vector<1x128xf32>
    %48 = vector.broadcast %47 : vector<1x128xf32> to vector<16x128xf32>
    %49 = arith.addf %46, %48 : vector<16x128xf32>
    %50 = arith.addf %49, %1 : vector<16x128xf32>
    %cst_40 = arith.constant 0.000000e+00 : f32
    %51 = vector.broadcast %cst_40 : f32 to vector<16x128xf32>
    %52 = arith.maximumf %50, %51 : vector<16x128xf32>
    %53 = vector.shape_cast %52 : vector<16x128xf32> to vector<1x16x128xf32>
    %c0_41 = arith.constant 0 : index
    %c0_42 = arith.constant 0 : index
    %c0_43 = arith.constant 0 : index
    %54 = vector.load %arg10[%c0_41, %c0_42, %c0_43] : memref<1x16x128xf32, #tpu.memory_space<vmem>>, vector<1x16x128xf32>
    tpu.vector_store %arg10[%c0_41, %c0_42, %c0_43], %53 {strides = array<i32>} : memref<1x16x128xf32, #tpu.memory_space<vmem>>, vector<1x16x128xf32>,
    return
  }
  func.func @transform_0(%arg0: i32) -> (i32, i32, i32) {
    %c0_i32 = arith.constant 0 : i32
    %c0_i32_0 = arith.constant 0 : i32
    %c0_i32_1 = arith.constant 0 : i32
    return %arg0, %c0_i32, %c0_i32_0 : i32, i32, i32
  }
  func.func @transform_1(%arg0: i32) -> (i32, i32) {
    %c0_i32 = arith.constant 0 : i32
    %c0_i32_0 = arith.constant 0 : i32
    %c0_i32_1 = arith.constant 0 : i32
    return %c0_i32, %c0_i32_0 : i32, i32
  }
  func.func @transform_2(%arg0: i32) -> (i32, i32) {
    %c0_i32 = arith.constant 0 : i32
    %c0_i32_0 = arith.constant 0 : i32
    %c0_i32_1 = arith.constant 0 : i32
    return %c0_i32, %c0_i32_0 : i32, i32
  }
  func.func @transform_3(%arg0: i32) -> (i32, i32, i32) {
    %c0_i32 = arith.constant 0 : i32
    %c0_i32_0 = arith.constant 0 : i32
    %c0_i32_1 = arith.constant 0 : i32
    %c0_i32_2 = arith.constant 0 : i32
    return %c0_i32, %c0_i32_0, %c0_i32_1 : i32, i32, i32
  }
  func.func @transform_4(%arg0: i32) -> (i32, i32) {
    %c0_i32 = arith.constant 0 : i32
    %c0_i32_0 = arith.constant 0 : i32
    %c0_i32_1 = arith.constant 0 : i32
    return %c0_i32, %c0_i32_0 : i32, i32
  }
  func.func @transform_5(%arg0: i32) -> (i32, i32) {
    %c0_i32 = arith.constant 0 : i32
    %c0_i32_0 = arith.constant 0 : i32
    %c0_i32_1 = arith.constant 0 : i32
    return %c0_i32, %c0_i32_0 : i32, i32
  }
  func.func @transform_6(%arg0: i32) -> (i32, i32, i32) {
    %c0_i32 = arith.constant 0 : i32
    %c0_i32_0 = arith.constant 0 : i32
    %c0_i32_1 = arith.constant 0 : i32
    %c0_i32_2 = arith.constant 0 : i32
    return %c0_i32, %c0_i32_0, %c0_i32_1 : i32, i32, i32
  }
  func.func @transform_7(%arg0: i32) -> (i32, i32) {
    %c0_i32 = arith.constant 0 : i32
    %c0_i32_0 = arith.constant 0 : i32
    %c0_i32_1 = arith.constant 0 : i32
    return %c0_i32, %c0_i32_0 : i32, i32
  }
  func.func @transform_8(%arg0: i32) -> (i32, i32) {
    %c0_i32 = arith.constant 0 : i32
    %c0_i32_0 = arith.constant 0 : i32
    %c0_i32_1 = arith.constant 0 : i32
    return %c0_i32, %c0_i32_0 : i32, i32
  }
  func.func @transform_9(%arg0: i32) -> (i32, i32, i32) {
    %c0_i32 = arith.constant 0 : i32
    %c0_i32_0 = arith.constant 0 : i32
    %c0_i32_1 = arith.constant 0 : i32
    return %arg0, %c0_i32, %c0_i32_0 : i32, i32, i32
  }
}

</mosaic_0001>

<bundles_post_ra>
// kernel: tile.23
= control target key start
LH: loop header
LB: loop body
LE: loop exit
PB: predicated region body
PF: predicated region fallthrough
CT: control target
= control target key end

     0   :  { %s28_s0 = inlined_call_operand.vmem [shape: f32[8], index: 0, kind: input, shape index: {}]   ;;  %s29_s1 = inlined_call_operand.vmem [shape: f32[16,8], index: 1, kind: output, shape index: {}]  }
   0x1   :  { %v4_v0 = vld [vmem:[%s28_s0] ss:$0 sm:$0xff] }
   0x2   :  { %5 = vst [vmem:[%s29_s1] sm:$0xff] %v4_v0 }
   0x3   :  { %8 = vst [vmem:[%s29_s1 + $0x8] sm:$0xff] %v4_v0 }

// kernel: tile.24
= control target key start
LH: loop header
LB: loop body
LE: loop exit
PB: predicated region body
PF: predicated region fallthrough
CT: control target
= control target key end

     0   :  { %s131_s10 = smov 120   ;;  %s132_s11 = smov 104   ;;  %vm3_vm0 = vcmask 64512   ;;  %vm9_vm1 = vcmask 1048512   ;;  %vm15_vm2 = vcmask 982912   ;;  %vm21_vm3 = vcmask 917312   ;;  %s207_s0 = inlined_call_operand.vmem [shape: f32[16,8], index: 0, kind: input, shape index: {}]   ;;  %s208_s1 = inlined_call_operand.vmem [shape: f32[1,128], index: 1, kind: output, shape index: {}]  }
   0x1   :  { %v101_v0 = vld [vmem:[%s207_s0 + $0xf] sm:$0x1]   ;;  %v103_v1 = vld [vmem:[%s207_s0 + $0xd] sm:$0x1]   ;;  %v105_v2 = vld [vmem:[%s207_s0 + $0xb] sm:$0x1]  }
   0x2   :  { %7 = vrot.lane.b32.xlu0 %v101_v0, %s131_s10  ;;  %19 = vrot.lane.b32.xlu1 %v103_v1, %s132_s11  ;;  %s133_s14 = smov 88   ;;  %v102_v3 = vld [vmem:[%s207_s0 + $0xe] sm:$0x1]   ;;  %v104_v4 = vld [vmem:[%s207_s0 + $0xc] sm:$0x1]   ;;  %s134_s19 = smov 112  }
   0x3   :  { %31 = vrot.lane.b32.xlu2 %v105_v2, %s133_s14  ;;  %s135_s20 = smov 96   ;;  %v106_v5 = vld [vmem:[%s207_s0 + $0xa] sm:$0x1]   ;;  %s136_s23 = smov 80   ;;  %v107_v6 = vld [vmem:[%s207_s0 + $0x9] sm:$0x1]  }
   0x4   :  { %v108_v7 = vld [vmem:[%s207_s0 + $0x8] sm:$0x1]   ;;  %s137_s28 = smov 72   ;;  %s138_s29 = smov 64   ;;  %v109_v8 = vld [vmem:[%s207_s0 + $0x7] sm:$0x1]  }
   0x5   :  { %s139_s3 = smov 56   ;;  %v110_v9 = vld [vmem:[%s207_s0 + $0x6] sm:$0x1]   ;;  %v111_v10 = vld [vmem:[%s207_s0 + $0x5] sm:$0x1]   ;;  %s140_s8 = smov 48  }
   0x6   :  { %s141_s9 = smov 40   ;;  %v112_v11 = vld [vmem:[%s207_s0 + $0x4] sm:$0x1]   ;;  %s142_s12 = smov 32   ;;  %v113_v12 = vld [vmem:[%s207_s0 + $0x3] sm:$0x1]  }
   0x7   :  { %v114_v13 = vld [vmem:[%s207_s0 + $0x2] sm:$0x1]   ;;  %s143_s17 = smov 24   ;;  %s144_s18 = smov 16   ;;  %v115_v14 = vld [vmem:[%s207_s0 + $0x1] sm:$0x1]  }
   0x8   :  { %s145_s21 = smov 8   ;;  %v2_v15 = vld [vmem:[%s207_s0] sm:$0x1]   ;;  %vm27_vm4 = vcmask 851712   ;;  %vm33_vm5 = vcmask 786112   ;;  %vm39_vm6 = vcmask 720512  }
   0x9   :  { %4 = vst.msk [vmem:[#allocation0] sm:$0x1] %vm3_vm0, %v2_v15   ;;  %vm45_vm7 = vcmask 654912   ;;  %vm51_vm8 = vcmask 589312   ;;  %vm57_vm9 = vcmask 523712   ;;  %vm63_vm10 = vcmask 458112  }
   0xa   :  { %13 = vrot.lane.b32.xlu0 %v102_v3, %s134_s19  ;;  %25 = vrot.lane.b32.xlu1 %v104_v4, %s135_s20  ;;  %vm69_vm11 = vcmask 392512   ;;  %vm75_vm12 = vcmask 326912   ;;  %vm81_vm13 = vcmask 261312   ;;  %vm87_vm14 = vcmask 195712  }
   0xb   :  { %37 = vrot.lane.b32.xlu2 %v106_v5, %s136_s23  ;;  %vm93_vm15 = vcmask 130112  }
  0x12   :  { %43 = vrot.lane.b32.xlu0 %v107_v6, %s137_s28  ;;  %49 = vrot.lane.b32.xlu1 %v108_v7, %s138_s29 }
  0x13   :  { %55 = vrot.lane.b32.xlu2 %v109_v8, %s139_s3 }
  0x1a   :  { %61 = vrot.lane.b32.xlu0 %v110_v9, %s140_s8  ;;  %67 = vrot.lane.b32.xlu1 %v111_v10, %s141_s9 }
  0x1b   :  { %73 = vrot.lane.b32.xlu2 %v112_v11, %s142_s12 }
  0x22   :  { %79 = vrot.lane.b32.xlu0 %v113_v12, %s143_s17  ;;  %85 = vrot.lane.b32.xlu1 %v114_v13, %s144_s18 }
  0x23   :  { %91 = vrot.lane.b32.xlu2 %v115_v14, %s145_s21 }
  0x5d   :  { %v32_v16 = vpop.permute.xlu2 %31  }
  0x65   :  { %v38_v17 = vpop.permute.xlu2 %37  }
  0x6d   :  { %v56_v18 = vpop.permute.xlu2 %55  }
  0x74   :  { %v8_v19 = vpop.permute.xlu0 %7   ;;  %v20_v20 = vpop.permute.xlu1 %19  }
  0x75   :  { %10 = vst.msk [vmem:[#allocation0] sm:$0x1] %vm9_vm1, %v8_v19   ;;  %v74_v21 = vpop.permute.xlu2 %73  }
  0x7c   :  { %v14_v22 = vpop.permute.xlu0 %13   ;;  %v26_v23 = vpop.permute.xlu1 %25  }
  0x7d   :  { %16 = vst.msk [vmem:[#allocation0] sm:$0x1] %vm15_vm2, %v14_v22   ;;  %v92_v24 = vpop.permute.xlu2 %91  }
  0x7e   :  { %22 = vst.msk [vmem:[#allocation0] sm:$0x1] %vm21_vm3, %v20_v20  }
  0x7f   :  { %28 = vst.msk [vmem:[#allocation0] sm:$0x1] %vm27_vm4, %v26_v23  }
  0x80   :  { %34 = vst.msk [vmem:[#allocation0] sm:$0x1] %vm33_vm5, %v32_v16  }
  0x81   :  { %40 = vst.msk [vmem:[#allocation0] sm:$0x1] %vm39_vm6, %v38_v17  }
  0x84   :  { %v44_v25 = vpop.permute.xlu0 %43   ;;  %v50_v26 = vpop.permute.xlu1 %49  }
  0x85   :  { %46 = vst.msk [vmem:[#allocation0] sm:$0x1] %vm45_vm7, %v44_v25  }
  0x86   :  { %52 = vst.msk [vmem:[#allocation0] sm:$0x1] %vm51_vm8, %v50_v26  }
  0x87   :  { %58 = vst.msk [vmem:[#allocation0] sm:$0x1] %vm57_vm9, %v56_v18  }
  0x8c   :  { %v62_v27 = vpop.permute.xlu0 %61   ;;  %v68_v28 = vpop.permute.xlu1 %67  }
  0x8d   :  { %64 = vst.msk [vmem:[#allocation0] sm:$0x1] %vm63_vm10, %v62_v27  }
  0x8e   :  { %70 = vst.msk [vmem:[#allocation0] sm:$0x1] %vm69_vm11, %v68_v28  }
  0x8f   :  { %76 = vst.msk [vmem:[#allocation0] sm:$0x1] %vm75_vm12, %v74_v21  }
  0x94   :  { %v80_v29 = vpop.permute.xlu0 %79   ;;  %v86_v30 = vpop.permute.xlu1 %85  }
  0x95   :  { %82 = vst.msk [vmem:[#allocation0] sm:$0x1] %vm81_vm13, %v80_v29  }
  0x96   :  { %88 = vst.msk [vmem:[#allocation0] sm:$0x1] %vm87_vm14, %v86_v30  }
  0x97   :  { %94 = vst.msk [vmem:[#allocation0] sm:$0x1] %vm93_vm15, %v92_v24  }
  0x9e   :  { %v97_v31 = vld [vmem:[#allocation0] sm:$0x1] }
  0x9f   :  { %100 = vst [vmem:[%s208_s1] sm:$0x1] %v97_v31 }

// kernel: basic_block_nhwc.1
= control target key start
LH: loop header
LB: loop body
LE: loop exit
PB: predicated region body
PF: predicated region fallthrough
CT: control target
= control target key end

     0   :  { %s1383_s30 = smov 0   ;;  %s1589_s0 = inlined_call_operand.vmem [shape: f32[2,16,128], index: 0, kind: input, shape index: {}]   ;;  %s1590_s1 = inlined_call_operand.vmem [shape: bf16[16,16], index: 1, kind: input, shape index: {}]   ;;  %s1591_s2 = inlined_call_operand.vmem [shape: bf16[16,16], index: 2, kind: input, shape index: {}]   ;;  %s1592_s3 = inlined_call_operand.vmem [shape: bf16[3,128,128], index: 3, kind: input, shape index: {}]   ;;  %s1593_s4 = inlined_call_operand.vmem [shape: f32[1,128], index: 4, kind: input, shape index: {}]   ;;  %s1594_s5 = inlined_call_operand.vmem [shape: f32[1,128], index: 5, kind: input, shape index: {}]   ;;  %s1595_s6 = inlined_call_operand.vmem [shape: bf16[3,128,128], index: 6, kind: input, shape index: {}]   ;;  %s1596_s7 = inlined_call_operand.vmem [shape: f32[1,128], index: 7, kind: input, shape index: {}]   ;;  %s1597_s8 = inlined_call_operand.vmem [shape: f32[1,128], index: 8, kind: input, shape index: {}]   ;;  %s1598_s9 = inlined_call_operand.vmem [shape: f32[2,16,128], index: 9, kind: output, shape index: {}]  }
   0x1 LB: > { %s982_s10 = sadd.s32 4294967295, %s1331_s30   ;;  %p986_p0 = scmp.ge.s32.totalorder %s1331_s30, 1  ;;  %s1331_s30 = sphi %s1383_s30, %s19_s30  }
   0x2   : > { %p287_p1 = scmp.lt.s32.totalorder %s1331_s30, 3 }
   0x4   : > { %p288_p2 = pnand %p986_p0, %p287_p1 }
   0x5   : > { %p323_p3 = scmp.lt.s32.totalorder (!%p288_p2), %s982_s10, 1 }
   0x6   : > { %291 = sbr.rel (%p288_p2) target bundleno = 616 (0x268), region = 56 }
   0xb   : > { %v1280_v0 = vld [vmem:[%s1592_s3 + $0x78] sm:$0xff]  ;;  %s1600_s10 = smov (!%p323_p3, %s982_s10), 1  ;;  %v1279_v2 = vld [vmem:[%s1592_s3 + $0x70] sm:$0xff]  ;;  %v1278_v7 = vld [vmem:[%s1592_s3 + $0x68] sm:$0xff]  ;;  %vm346_vm0 = vcmask 130048  }
   0xc   : > { %v1272_v1 = vld [vmem:[%s1592_s3 + $0x38] sm:$0xff]  ;;  %469 = vmatpush.bf16.msra.mxu2 %v1280_v0  ;;  %v1271_v3 = vld [vmem:[%s1592_s3 + $0x30] sm:$0xff]  ;;  %s1261_s19 = sshll.u32 %s1600_s10, 4  ;;  %v1270_v9 = vld [vmem:[%s1592_s3 + $0x28] sm:$0xff] }
   0xd   : > { %531 = vmatpush.bf16.msra.mxu3 %v1272_v1  ;;  %v1288_v4 = vld [vmem:[%s1592_s3 + $0xb8] sm:$0xff]  ;;  %s327_s24 = scalar_lea.vmem %s1589_s0, %s1261_s19  ;;  %v1429_v10 = vld [vmem:[%s1590_s1] sm:$0xff]  ;;  %v1275_v16 = vld [vmem:[%s1592_s3 + $0x50] sm:$0xff]  ;;  %s332_s16 = scalar_lea.vmem %s1598_s9, %s1261_s19 }
   0xe   : > { %v1414_v5 = vld [vmem:[%s327_s24] sm:$0xff]  ;;  %v1416_v6 = vld [vmem:[%s327_s24 + $0x8] sm:$0xff]  ;;  %610 = vmatpush.bf16.msra.mxu0 %v1288_v4  ;;  %v1276_v13 = vld [vmem:[%s1592_s3 + $0x58] sm:$0xff] }
   0xf   : > { %v340_v8 = vpack.c.bf16 %v1416_v6, %v1414_v5  ;;  %v1277_v11 = vld [vmem:[%s1592_s3 + $0x60] sm:$0xff]  ;;  %v1268_v14 = vld [vmem:[%s1592_s3 + $0x18] sm:$0xff]  ;;  %v1267_v17 = vld [vmem:[%s1592_s3 + $0x10] sm:$0xff] }
  0x10   : > { %470 = vmatpush.bf16.msra.mxu2 %v1279_v2  ;;  %v1269_v12 = vld [vmem:[%s1592_s3 + $0x20] sm:$0xff]  ;;  %v1287_v18 = vld [vmem:[%s1592_s3 + $0xb0] sm:$0xff]  ;;  %v1274_v19 = vld [vmem:[%s1592_s3 + $0x48] sm:$0xff] }
  0x11   : > { %532 = vmatpush.bf16.msra.mxu3 %v1271_v3  ;;  %357 = vmatpush.bf16.msra.mxu1 %v340_v8  ;;  %v1448_v15 = vld [vmem:[%s1591_s2] sm:$0xff]  ;;  %v1266_v20 = vld [vmem:[%s1592_s3 + $0x8] sm:$0xff]  ;;  %v1284_v25 = vld [vmem:[%s1592_s3 + $0x98] sm:$0xff] }
  0x12   : > { %611 = vmatpush.bf16.msra.mxu0 %v1287_v18  ;;  %v1286_v21 = vld [vmem:[%s1592_s3 + $0xa8] sm:$0xff]  ;;  %v1273_v22 = vld [vmem:[%s1592_s3 + $0x40] sm:$0xff]  ;;  %v1283_v26 = vld [vmem:[%s1592_s3 + $0x90] sm:$0xff] }
  0x13   : > { %v1265_v23 = vld [vmem:[%s1592_s3] sm:$0xff]  ;;  %v1282_v27 = vld [vmem:[%s1592_s3 + $0x88] sm:$0xff]  ;;  %v1304_v29 = vld [vmem:[%s1595_s6 + $0x78] sm:$0xff] }
  0x14   : > { %471 = vmatpush.bf16.msra.mxu2 %v1278_v7  ;;  %995 = vmatmul.msk.bf16.vlgmr.msra.gmra.mxu1 %vm346_vm0, %v1429_v10  ;;  %v1285_v24 = vld [vmem:[%s1592_s3 + $0xa0] sm:$0xff]  ;;  %v1303_v36 = vld [vmem:[%s1595_s6 + $0x70] sm:$0xff]  ;;  %v1302_v37 = vld [vmem:[%s1595_s6 + $0x68] sm:$0xff] }
  0x15   : > { %380 = vmatpush.bf16.msrb.mxu1 %v340_v8  ;;  %533 = vmatpush.bf16.msra.mxu3 %v1270_v9  ;;  %v1281_v28 = vld [vmem:[%s1592_s3 + $0x80] sm:$0xff]  ;;  %v1300_v39 = vld [vmem:[%s1595_s6 + $0x58] sm:$0xff]  ;;  %v1299_v40 = vld [vmem:[%s1595_s6 + $0x50] sm:$0xff] }
  0x16   : > { %612 = vmatpush.bf16.msra.mxu0 %v1286_v21  ;;  %v1301_v38 = vld [vmem:[%s1595_s6 + $0x60] sm:$0xff]  ;;  %v1298_v41 = vld [vmem:[%s1595_s6 + $0x48] sm:$0xff]  ;;  %v1296_v51 = vld [vmem:[%s1595_s6 + $0x38] sm:$0xff] }
  0x17   : > { %v1297_v42 = vld [vmem:[%s1595_s6 + $0x40] sm:$0xff]  ;;  %v1312_v55 = vld [vmem:[%s1595_s6 + $0xb8] sm:$0xff]  ;;  %v1295_v57 = vld [vmem:[%s1595_s6 + $0x30] sm:$0xff] }
  0x18   : > { %472 = vmatpush.bf16.msra.mxu2 %v1277_v11  ;;  %v1321_v48 = vld [vmem:[%s1593_s4] ss:$0 sm:$0xff]  ;;  %v1294_v61 = vld [vmem:[%s1595_s6 + $0x28] sm:$0xff]  ;;  %v1292_v3 = vld [vmem:[%s1595_s6 + $0x18] sm:$0xff] }
  0x19   : > { %534 = vmatpush.bf16.msra.mxu3 %v1269_v12  ;;  %v1322_v54 = vld [vmem:[%s1594_s5] ss:$0 sm:$0xff]  ;;  %v1291_v4 = vld [vmem:[%s1595_s6 + $0x10] sm:$0xff]  ;;  %v1310_v9 = vld [vmem:[%s1595_s6 + $0xa8] sm:$0xff] }
  0x1a   : > { %613 = vmatpush.bf16.msra.mxu0 %v1285_v24  ;;  %v1293_v1 = vld [vmem:[%s1595_s6 + $0x20] sm:$0xff]  ;;  %v1311_v7 = vld [vmem:[%s1595_s6 + $0xb0] sm:$0xff]  ;;  %v1308_v12 = vld [vmem:[%s1595_s6 + $0x98] sm:$0xff] }
  0x1b   : > { %v1309_v11 = vld [vmem:[%s1595_s6 + $0xa0] sm:$0xff] }
  0x1c   : > { %473 = vmatpush.bf16.msra.mxu2 %v1276_v13  ;;  %v1307_v13 = vld [vmem:[%s1595_s6 + $0x90] sm:$0xff] }
  0x1d   : > { %535 = vmatpush.bf16.msra.mxu3 %v1268_v14  ;;  %v1306_v14 = vld [vmem:[%s1595_s6 + $0x88] sm:$0xff] }
  0x1e   : > { %614 = vmatpush.bf16.msra.mxu0 %v1284_v25  ;;  %v1323_v25 = vld [vmem:[%s1596_s7] ss:$0 sm:$0xff] }
  0x20   : > { %474 = vmatpush.bf16.msra.mxu2 %v1275_v16 }
  0x21   : > { %536 = vmatpush.bf16.msra.mxu3 %v1267_v17 }
  0x22   : > { %615 = vmatpush.bf16.msra.mxu0 %v1283_v26 }
  0x24   : > { %1000 = vmatmul.msk.bf16.vlgmr.msrb.gmra.mxu1 %vm346_vm0, %v1448_v15  ;;  %475 = vmatpush.bf16.msra.mxu2 %v1274_v19 }
  0x25   : > { %537 = vmatpush.bf16.msra.mxu3 %v1266_v20 }
  0x26   : > { %616 = vmatpush.bf16.msra.mxu0 %v1282_v27 }
  0x28   : > { %476 = vmatpush.bf16.msra.mxu2 %v1273_v22 }
  0x29   : > { %538 = vmatpush.bf16.msra.mxu3 %v1265_v23 }
  0x2a   : > { %617 = vmatpush.bf16.msra.mxu0 %v1281_v28  ;;  %v1324_v28 = vld [vmem:[%s1597_s8] ss:$0 sm:$0xff] }
  0x2b   : > { %477 = vmatmul.bf16.vlgmr.msra.gmra.mxu2 %v340_v8  ;;  %v1290_v8 = vld [vmem:[%s1595_s6 + $0x8] sm:$0xff] }
  0x2c   : > { %752 = vmatpush.bf16.msrb.mxu2 %v1304_v29 }
  0x2d   : > { %814 = vmatpush.bf16.msrb.mxu3 %v1296_v51 }
  0x2e   : > { %893 = vmatpush.bf16.msrb.mxu0 %v1312_v55 }
  0x30   : > { %753 = vmatpush.bf16.msrb.mxu2 %v1303_v36 }
  0x31   : > { %815 = vmatpush.bf16.msrb.mxu3 %v1295_v57 }
  0x32   : > { %894 = vmatpush.bf16.msrb.mxu0 %v1311_v7 }
  0x34   : > { %754 = vmatpush.bf16.msrb.mxu2 %v1302_v37 }
  0x35   : > { %816 = vmatpush.bf16.msrb.mxu3 %v1294_v61 }
  0x36   : > { %895 = vmatpush.bf16.msrb.mxu0 %v1310_v9 }
  0x38   : > { %755 = vmatpush.bf16.msrb.mxu2 %v1301_v38 }
  0x39   : > { %817 = vmatpush.bf16.msrb.mxu3 %v1293_v1 }
  0x3a   : > { %896 = vmatpush.bf16.msrb.mxu0 %v1309_v11 }
  0x3c   : > { %756 = vmatpush.bf16.msrb.mxu2 %v1300_v39 }
  0x3d   : > { %818 = vmatpush.bf16.msrb.mxu3 %v1292_v3 }
  0x3e   : > { %897 = vmatpush.bf16.msrb.mxu0 %v1308_v12 }
  0x40   : > { %757 = vmatpush.bf16.msrb.mxu2 %v1299_v40 }
  0x41   : > { %819 = vmatpush.bf16.msrb.mxu3 %v1291_v4 }
  0x42   : > { %898 = vmatpush.bf16.msrb.mxu0 %v1307_v13 }
  0x44   : > { %758 = vmatpush.bf16.msrb.mxu2 %v1298_v41 }
  0x45   : > { %820 = vmatpush.bf16.msrb.mxu3 %v1290_v8 }
  0x46   : > { %899 = vmatpush.bf16.msrb.mxu0 %v1306_v14 }
  0x48   : > { %759 = vmatpush.bf16.msrb.mxu2 %v1297_v42 }
  0x91   : > { %v359_v30 = vpop.f32.mrf.mxu1 }
  0x99   : > { %v361_v31 = vpop.f32.mrf.mxu1 }
  0x9a   : > { %v364_v32 = vpack.c.bf16 %v361_v31, %v359_v30 }
  0x9c   : > { %539 = vmatmul.bf16.vlgmr.msra.gmra.mxu3 %v364_v32 }
  0xa1   : > { %v382_v33 = vpop.f32.mrf.mxu1 }
  0xa9   : > { %v384_v34 = vpop.f32.mrf.mxu1 }
  0xaa   : > { %v387_v35 = vpack.c.bf16 %v384_v34, %v382_v33 }
  0xac   : > { %618 = vmatmul.bf16.vlgmr.msra.gmra.mxu0 %v387_v35 }
  0xae   : > { %v478_v43 = vpop.f32.mrf.mxu2 }
  0xb6   : > { %v480_v49 = vpop.f32.mrf.mxu2 }
 0x11f   : > { %v540_v44 = vpop.f32.mrf.mxu3 }
 0x120   : > { %v541_v46 = vadd.f32 %v540_v44, %v478_v43 }
 0x127   : > { %v542_v50 = vpop.f32.mrf.mxu3 }
 0x128   : > { %v543_v52 = vadd.f32 %v542_v50, %v480_v49 }
 0x129   : > { %v619_v45 = vpop.f32.mrf.mxu0 }
 0x12a   : > { %v624_v47 = vadd.f32 %v619_v45, %v541_v46 }
 0x12c   : > { %v630_v53 = vmul.f32 %v1321_v48, %v624_v47 }
 0x12e   : > { %v636_v59 = vadd.f32 %v1322_v54, %v630_v53 }
 0x130   : > { %v638_v63 = vmax.f32 %v636_v59, 0.0 }
 0x131   : > { %v621_v56 = vpop.f32.mrf.mxu0 }
 0x132   : > { %v625_v58 = vadd.f32 %v621_v56, %v543_v52 }
 0x134   : > { %v631_v60 = vmul.f32 %v1321_v48, %v625_v58 }
 0x136   : > { %v637_v62 = vadd.f32 %v1322_v54, %v631_v60 }
 0x138   : > { %v639_v0 = vmax.f32 %v637_v62, 0.0 }
 0x13a   : > { %v640_v2 = vpack.c.bf16 %v639_v0, %v638_v63 }
 0x13c   : > { %648 = vmatpush.bf16.msra.mxu1 %v640_v2  ;;  %760 = vmatmul.bf16.vlgmr.msrb.gmra.mxu2 %v640_v2 }
 0x13f   : > { %1129 = vmatmul.msk.bf16.vlgmr.msra.gmra.mxu1 %vm346_vm0, %v1429_v10  ;;  %v1289_v10 = vld [vmem:[%s1595_s6] sm:$0xff] }
 0x140   : > { %663 = vmatpush.bf16.msrb.mxu1 %v640_v2  ;;  %821 = vmatpush.bf16.msrb.mxu3 %v1289_v10 }
 0x14f   : > { %1130 = vmatmul.msk.bf16.vlgmr.msrb.gmra.mxu1 %vm346_vm0, %v1448_v15  ;;  %v1305_v15 = vld [vmem:[%s1595_s6 + $0x80] sm:$0xff] }
 0x150   : > { %900 = vmatpush.bf16.msrb.mxu0 %v1305_v15 }
 0x1bc   : > { %v650_v16 = vpop.f32.mrf.mxu1 }
 0x1bf   : > { %v761_v23 = vpop.f32.mrf.mxu2 }
 0x1c4   : > { %v652_v17 = vpop.f32.mrf.mxu1 }
 0x1c5   : > { %v655_v18 = vpack.c.bf16 %v652_v17, %v650_v16 }
 0x1c7   : > { %822 = vmatmul.bf16.vlgmr.msrb.gmra.mxu3 %v655_v18  ;;  %v763_v32 = vpop.f32.mrf.mxu2 }
 0x1cc   : > { %v665_v19 = vpop.f32.mrf.mxu1 }
 0x1d4   : > { %v667_v20 = vpop.f32.mrf.mxu1 }
 0x1d5   : > { %v670_v21 = vpack.c.bf16 %v667_v20, %v665_v19 }
 0x1d7   : > { %901 = vmatmul.bf16.vlgmr.msrb.gmra.mxu0 %v670_v21 }
 0x24a   : > { %v823_v22 = vpop.f32.mrf.mxu3 }
 0x24b   : > { %v824_v24 = vadd.f32 %v823_v22, %v761_v23 }
 0x252   : > { %v825_v30 = vpop.f32.mrf.mxu3 }
 0x253   : > { %v826_v33 = vadd.f32 %v825_v30, %v763_v32 }
 0x254   : > { %v902_v26 = vpop.f32.mrf.mxu0 }
 0x255   : > { %v907_v27 = vadd.f32 %v902_v26, %v824_v24 }
 0x257   : > { %v913_v29 = vmul.f32 %v1323_v25, %v907_v27 }
 0x259   : > { %v919_v31 = vadd.f32 %v1324_v28, %v913_v29 }
 0x25b   : > { %v921_v34 = vadd.f32 %v919_v31, %v1414_v5 }
 0x25c   : > { %v904_v35 = vpop.f32.mrf.mxu0 }
 0x25d   : > { %v923_v36 = vmax.f32 %v921_v34, 0.0  ;;  %v908_v37 = vadd.f32 %v904_v35, %v826_v33 }
 0x25f   : > { %925 = vst [vmem:[%s332_s16] sm:$0xff] %v923_v36  ;;  %v914_v38 = vmul.f32 %v1323_v25, %v908_v37 }
 0x261   : > { %v920_v39 = vadd.f32 %v1324_v28, %v914_v38 }
 0x263   : > { %v922_v40 = vadd.f32 %v920_v39, %v1416_v6 }
 0x265   : > { %v924_v41 = vmax.f32 %v922_v40, 0.0 }
 0x267   : > { %926 = vst [vmem:[%s332_s16 + $0x8] sm:$0xff] %v924_v41 }
 0x268 PF: > { %s19_s30 = sadd.s32 1, %s1331_s30  }
 0x269   : > { %p16_p4 = scmp.ge.s32.totalorder %s19_s30, 4  }
 0x26b   :  { %18 = sbr.rel (!%p16_p4) target bundleno = 1 (0x1), region = 90 }

</bundles_post_ra>
